<compile_context>
chip_gen: v7x
topology: tpu7x:2x2x1
jax: 0.10.0
libtpu: 0.0.40
codegen_flags: <defaults>
</compile_context>

<pallas_src>
import functools

import jax
import jax.numpy as jnp
from jax.experimental import pallas as pl
from jax.experimental.pallas import tpu as pltpu


def _round_up(a, b):
    return (a + b - 1) // b * b


def _ssa_kernel(inv_t_ref, coord_ref, x_ref, out_ref):
    # inv_t_ref : SMEM (1,) f32      -- 1 / temperature
    # coord_ref : VMEM (2, H*W) f32  -- row 0 = x coords, row 1 = y coords (resident)
    # x_ref     : VMEM (R, H*W)      -- flattened maps, input dtype (f32 or bf16)
    # out_ref   : VMEM (R, 2)        -- [E[x], E[y]] per map
    inv_t = inv_t_ref[0]
    x = x_ref[...].astype(jnp.float32) * inv_t      # scale by 1/T (no per-element divide)

    # numerically-stable softmax statistics fused with the coordinate
    # expectation; p = e / s is never materialized over the full tile.
    m = jnp.max(x, axis=-1, keepdims=True)
    e = jnp.exp(x - m)

    xc = coord_ref[0:1, :]                          # (1, HW), broadcast over rows
    yc = coord_ref[1:2, :]

    s = jnp.sum(e, axis=-1, keepdims=True)          # (R, 1)
    sx = jnp.sum(e * xc, axis=-1, keepdims=True)    # (R, 1)
    sy = jnp.sum(e * yc, axis=-1, keepdims=True)    # (R, 1)

    inv_s = pl.reciprocal(s, approx=False)          # exact: keeps tight tolerances
    out_ref[...] = jnp.concatenate(
        [sx * inv_s, sy * inv_s], axis=-1
    ).astype(out_ref.dtype)


def _auto_block_rows(nc, hw):
    """Largest sublane-aligned row tile with ~1M elements (~4 MiB f32) per block.

    Double-buffered input + a few f32 temporaries then stay well inside even
    v7x's 64 MiB VMEM, while the per-step pipeline overhead is fully amortized.
    """
    target_elems = 1 << 20
    rows = max(8, min(nc, target_elems // max(hw, 1)))
    rows = max(8, (rows // 8) * 8)
    # Keep >= 2 grid steps when there is enough work so v7x's 2 TensorCores
    # both get a share of the "parallel" grid axis (no-op on v5e/v6e).
    if rows >= nc and nc >= 16:
        rows = _round_up((nc + 1) // 2, 8)
    return rows


def spatial_soft_argmax(x, temperature, normalize=False, block_rows=None):
    """x: (N, C, H, W). temperature: scalar or (1,). Returns (N, C*2), dtype of x."""
    n, c, h, w = x.shape
    nc, hw = n * c, h * w

    # Keep the caller's dtype on the HBM side (bf16 halves the bytes read).
    x_flat = x.reshape(nc, hw)

    if block_rows is None:
        block_rows = _auto_block_rows(nc, hw)
    block_rows = max(8, (block_rows // 8) * 8)

    nc_p = _round_up(nc, block_rows)
    if nc_p != nc:
        x_flat = jnp.pad(x_flat, ((0, nc_p - nc), (0, 0)))

    # 1/temperature as an SMEM scalar (multiply in-kernel instead of divide).
    inv_t = (1.0 / jnp.asarray(temperature, jnp.float32)).reshape(-1)[:1]

    # Precompute coordinate grids (and normalization) once; resident in VMEM.
    xs = jnp.arange(w, dtype=jnp.float32)
    ys = jnp.arange(h, dtype=jnp.float32)
    if normalize:
        # max(.,1) only guards the degenerate H==1 / W==1 case against div-by-zero.
        xs = xs / max(w - 1, 1) * 2.0 - 1.0
        ys = ys / max(h - 1, 1) * 2.0 - 1.0
    xc = jnp.tile(xs, (h,))        # flattened index l -> l % W
    yc = jnp.repeat(ys, w)         # flattened index l -> l // W
    coords = jnp.stack([xc, yc], axis=0)          # (2, H*W) f32

    out = pl.pallas_call(
        _ssa_kernel,
        out_shape=jax.ShapeDtypeStruct((nc_p, 2), x.dtype),
        grid=(nc_p // block_rows,),
        in_specs=[
            pl.BlockSpec(memory_space=pltpu.MemorySpace.SMEM),      # 1/temperature
            pl.BlockSpec((2, hw), lambda i: (0, 0)),                # resident coords
            pl.BlockSpec((block_rows, hw), lambda i: (i, 0)),       # flattened maps
        ],
        out_specs=pl.BlockSpec((block_rows, 2), lambda i: (i, 0)),
        compiler_params=pltpu.CompilerParams(
            dimension_semantics=("parallel",),
            vmem_limit_bytes=48 * 1024 * 1024,
        ),
    )(inv_t, coords, x_flat)

    out = out[:nc]                      # drop padding rows
    return out.reshape(n, c * 2)        # interleaved (x0, y0, x1, y1, ...)


def _reference(x, temperature, normalize=False):
    # pure-JAX reference mirroring the PyTorch forward
    n, c, h, w = x.shape
    xf = x.astype(jnp.float32)
    p = jax.nn.softmax(xf.reshape(n * c, h * w) / temperature[0], axis=1)
    p = p.reshape(n, c, h, w)
    xr = jnp.arange(w, dtype=jnp.float32)
    yr = jnp.arange(h, dtype=jnp.float32)
    if normalize:
        xr = xr / (w - 1) * 2 - 1
        yr = yr / (h - 1) * 2 - 1
    image_x = jnp.tile(xr[None, :], (h, 1))
    image_y = jnp.tile(yr[None, :], (w, 1)).T
    coords = jnp.stack([image_x, image_y], axis=-1)            # (H, W, 2)
    out = jnp.sum(p[..., None] * coords[None, None], axis=(2, 3))
    return out.reshape(n, c * 2)


if __name__ == "__main__":
    key = jax.random.PRNGKey(0)

    # temperature=None in the module -> learnable nn.Parameter(torch.ones(1));
    # initialize deterministically to 1.0
    temperature = jnp.ones((1,), dtype=jnp.float32)

    # Case 1: the module's canonical small shape (single grid step).
    N, C, H, W = 2, 4, 16, 16
    x = jax.random.normal(key, (N, C, H, W), dtype=jnp.float32)

    out = jax.block_until_ready(spatial_soft_argmax(x, temperature, normalize=False))
    ref = _reference(x, temperature, normalize=False)
    assert out.shape == (N, C * 2), out.shape
    assert jnp.allclose(out, ref, atol=1e-4, rtol=1e-4)

    out_n = jax.block_until_ready(spatial_soft_argmax(x, temperature, normalize=True))
    ref_n = _reference(x, temperature, normalize=True)
    assert jnp.allclose(out_n, ref_n, atol=1e-4, rtol=1e-4)

    # Case 2: nc=16 -> exercises the multi-block (2-step) grid path.
    key2 = jax.random.PRNGKey(1)
    x2 = jax.random.normal(key2, (2, 8, 16, 16), dtype=jnp.float32)
    out2 = jax.block_until_ready(spatial_soft_argmax(x2, temperature, normalize=False))
    ref2 = _reference(x2, temperature, normalize=False)
    assert jnp.allclose(out2, ref2, atol=1e-4, rtol=1e-4)

    # Case 3: nc=12 -> exercises row padding + multi-block grid.
    key3 = jax.random.PRNGKey(2)
    x3 = jax.random.normal(key3, (3, 4, 16, 16), dtype=jnp.float32)
    out3 = jax.block_until_ready(spatial_soft_argmax(x3, temperature, normalize=True))
    ref3 = _reference(x3, temperature, normalize=True)
    assert jnp.allclose(out3, ref3, atol=1e-4, rtol=1e-4)

    print("KERNEL_OK")
</pallas_src>

<mosaic_0001>
module attributes {stable_mosaic.version = 11 : i64} {
  func.func @_ssa_kernel(%arg0: i32, %arg1: memref<1xf32, #tpu.memory_space<smem>>, %arg2: memref<2x256xf32, #tpu.memory_space<vmem>>, %arg3: memref<8x256xf32, #tpu.memory_space<vmem>>, %arg4: memref<8x2xf32, #tpu.memory_space<vmem>>) attributes {dimension_semantics = [#tpu.dimension_semantics<parallel>], iteration_bounds = array<i64: 1>, scalar_prefetch = 0 : i64, scratch_operands = 0 : i64, tpu.core_type = #tpu.core_type<tc>, window_params = [{transform_indices = @transform_0, window_bounds = array<i64: 1>}, {pipeline_mode = #tpu.pipeline_mode<synchronous>, transform_indices = @transform_1, window_bounds = array<i64: 2, 256>}, {transform_indices = @transform_2, window_bounds = array<i64: 8, 256>}, {transform_indices = @transform_3, window_bounds = array<i64: 8, 2>}]} {
    %c0 = arith.constant 0 : index
    %0 = memref.load %arg1[%c0] : memref<1xf32, #tpu.memory_space<smem>>
    %c0_0 = arith.constant 0 : index
    %c0_1 = arith.constant 0 : index
    %1 = vector.load %arg3[%c0_0, %c0_1] : memref<8x256xf32, #tpu.memory_space<vmem>>, vector<8x256xf32>
    %2 = vector.broadcast %0 : f32 to vector<8x256xf32>
    %3 = arith.mulf %1, %2 : vector<8x256xf32>
    %cst = arith.constant dense<0xFF800000> : vector<8xf32>
    %4 = vector.multi_reduction <maximumf>, %3, %cst [1] : vector<8x256xf32> to vector<8xf32>
    %5 = vector.shape_cast %4 : vector<8xf32> to vector<8x1xf32>
    %6 = vector.broadcast %5 : vector<8x1xf32> to vector<8x256xf32>
    %7 = arith.subf %3, %6 : vector<8x256xf32>
    %8 = math.exp %7 : vector<8x256xf32>
    %c0_2 = arith.constant 0 : index
    %c0_3 = arith.constant 0 : index
    %9 = vector.load %arg2[%c0_2, %c0_3] : memref<2x256xf32, #tpu.memory_space<vmem>>, vector<1x256xf32>
    %c1 = arith.constant 1 : index
    %c0_4 = arith.constant 0 : index
    %10 = vector.load %arg2[%c1, %c0_4] : memref<2x256xf32, #tpu.memory_space<vmem>>, vector<1x256xf32>
    %cst_5 = arith.constant dense<0.000000e+00> : vector<8xf32>
    %11 = vector.multi_reduction <add>, %8, %cst_5 [1] : vector<8x256xf32> to vector<8xf32>
    %12 = vector.shape_cast %11 : vector<8xf32> to vector<8x1xf32>
    %13 = vector.broadcast %9 : vector<1x256xf32> to vector<8x256xf32>
    %14 = arith.mulf %8, %13 : vector<8x256xf32>
    %cst_6 = arith.constant dense<0.000000e+00> : vector<8xf32>
    %15 = vector.multi_reduction <add>, %14, %cst_6 [1] : vector<8x256xf32> to vector<8xf32>
    %16 = vector.shape_cast %15 : vector<8xf32> to vector<8x1xf32>
    %17 = vector.broadcast %10 : vector<1x256xf32> to vector<8x256xf32>
    %18 = arith.mulf %8, %17 : vector<8x256xf32>
    %cst_7 = arith.constant dense<0.000000e+00> : vector<8xf32>
    %19 = vector.multi_reduction <add>, %18, %cst_7 [1] : vector<8x256xf32> to vector<8xf32>
    %20 = vector.shape_cast %19 : vector<8xf32> to vector<8x1xf32>
    %21 = tpu.reciprocal %12 : vector<8x1xf32> -> vector<8x1xf32>
    %22 = arith.mulf %16, %21 : vector<8x1xf32>
    %23 = arith.mulf %20, %21 : vector<8x1xf32>
    %24 = tpu.concatenate %22, %23 in 1 : vector<8x1xf32>, vector<8x1xf32> -> vector<8x2xf32>
    %c0_8 = arith.constant 0 : index
    %c0_9 = arith.constant 0 : index
    %25 = vector.load %arg4[%c0_8, %c0_9] : memref<8x2xf32, #tpu.memory_space<vmem>>, vector<8x2xf32>
    tpu.vector_store %arg4[%c0_8, %c0_9], %24 {strides = array<i32>} : memref<8x2xf32, #tpu.memory_space<vmem>>, vector<8x2xf32>,
    return
  }
  func.func @transform_0(%arg0: i32) -> i32 {
    %c0_i32 = arith.constant 0 : i32
    %c0_i32_0 = arith.constant 0 : i32
    return %c0_i32 : i32
  }
  func.func @transform_1(%arg0: i32) -> (i32, i32) {
    %c0_i32 = arith.constant 0 : i32
    %c0_i32_0 = arith.constant 0 : i32
    %c0_i32_1 = arith.constant 0 : i32
    return %c0_i32, %c0_i32_0 : i32, i32
  }
  func.func @transform_2(%arg0: i32) -> (i32, i32) {
    %c0_i32 = arith.constant 0 : i32
    %c0_i32_0 = arith.constant 0 : i32
    return %arg0, %c0_i32 : i32, i32
  }
  func.func @transform_3(%arg0: i32) -> (i32, i32) {
    %c0_i32 = arith.constant 0 : i32
    %c0_i32_0 = arith.constant 0 : i32
    return %arg0, %c0_i32 : i32, i32
  }
}

</mosaic_0001>

<bundles_post_ra>
// kernel: tpu_custom_call.1
= control target key start
LH: loop header
LB: loop body
LE: loop exit
PB: predicated region body
PF: predicated region fallthrough
CT: control target
= control target key end

     0   :  { %9 = vsyncpa [#allocation4], 0  ;;  %s213_s0 = inlined_call_operand.<no memory space> [shape: f32[1], index: 0, kind: input, shape index: {}]   ;;  %s214_s1 = inlined_call_operand.hbm [shape: f32[2,256], index: 1, kind: input, shape index: {}]   ;;  %s215_s2 = inlined_call_operand.hbm [shape: f32[8,256], index: 2, kind: input, shape index: {}]   ;;  %s216_s3 = inlined_call_operand.vmem [shape: f32[8,2], index: 3, kind: output, shape index: {}]  }
   0x1   :  { %10 = vsyncpa [#allocation6], 0  ;;  %s161_s12 = smov [#allocation3]   ;;  %s162_s14 = smov [#allocation5]  }
   0x2   :  { %s19_s13 = sshll.u32 %s161_s12, 4  ;;  %s29_s15 = sshll.u32 %s162_s14, 4  ;;  %s20_s13 = int_to_ptr.vmem [resolvable:$true] %s19_s13  ;;  %s30_s15 = int_to_ptr.vmem [resolvable:$true] %s29_s15 }
   0x3   :  { %s113_s18 = scalar_lea.hbm %s214_s1, 64 }
   0x4   :  { %p114_p0 = scmp.ne.s32.totalorder %s214_s1, %s113_s18  ;;  %p117_p1 = scmp.lt.u32.totalorder %s113_s18, %s214_s1 }
   0x6   :  { %p119_p2 = pnand %p117_p1, %p114_p0 }
   0x8   :  { %122 = shalt.err (!%p119_p2)
}
   0x9   :  { %s123_s23 = scalar_lea.vmem %s20_s13, 64  ;;  %p128_p4 = scmp.lt.s32.totalorder %s20_s13, %s20_s13 }
   0xa   :  { %p124_p3 = scmp.ne.s32.totalorder %s20_s13, %s123_s23  ;;  %p129_p5 = scmp.lt.s32.totalorder %s123_s23, %s123_s23 }
   0xc   :  { %p130_p6 = por %p129_p5, %p128_p4 }
   0xe   :  { %p131_p7 = pnand %p130_p6, %p124_p3 }
  0x10   :  { %134 = shalt.err (!%p131_p7)
}
  0x11   :  { %22 = dma.hbm_to_vmem [thread:$0]  %s214_s1, 64, %s20_s13, [#allocation4]  }
  0x12   :  { %s135_s28 = scalar_lea.hbm %s215_s2, 256 }
  0x13   :  { %p136_p8 = scmp.ne.s32.totalorder %s215_s2, %s135_s28  ;;  %p139_p9 = scmp.lt.u32.totalorder %s135_s28, %s215_s2 }
  0x15   :  { %p141_p10 = pnand %p139_p9, %p136_p8 }
  0x17   :  { %144 = shalt.err (!%p141_p10)
}
  0x18   :  { %s145_s6 = scalar_lea.vmem %s30_s15, 256  ;;  %p150_p12 = scmp.lt.s32.totalorder %s30_s15, %s30_s15 }
  0x19   :  { %p146_p11 = scmp.ne.s32.totalorder %s30_s15, %s145_s6  ;;  %p151_p13 = scmp.lt.s32.totalorder %s145_s6, %s145_s6 }
  0x1b   :  { %p152_p0 = por %p151_p13, %p150_p12 }
  0x1d   :  { %p153_p1 = pnand %p152_p0, %p146_p11 }
  0x1f   :  { %156 = shalt.err (!%p153_p1)
}
  0x20   :  { %32 = dma.hbm_to_vmem [thread:$0]  %s215_s2, 256, %s30_s15, [#allocation6]  }
  0x21   :  { %157 = dma.done.wait [#allocation4], 64  }
  0x22   :  { %158 = vsyncadd [#allocation4], 4294967232 }
  0x23   :  { %159 = dma.done.wait [#allocation6], 256  }
  0x24   :  { %160 = vsyncadd [#allocation6], 4294967040  ;;  %v42_v0 = vstv %s213_s0  ;;  %v40_v1 = vld [vmem:[#allocation5] sm:$0xff]  ;;  %v41_v2 = vld [vmem:[#allocation5 + $0x8] sm:$0xff]  ;;  %v61_v7 = vlaneseq  ;;  %vm95_vm0 = vcmask 7168   ;;  %vm97_vm1 = vcmask 15360  }
  0x25   :  { %v43_v3 = vmul.f32 %v42_v0, %v40_v1  ;;  %v44_v4 = vmul.f32 %v42_v0, %v41_v2  ;;  %v54_v14 = vld [vmem:[#allocation3] ss:$2 sm:$0x3]  ;;  %v56_v17 = vld [vmem:[#allocation3 + $0x1] ss:$2 sm:$0x3] }
  0x26   :  { %v62_v12 = vshrl.u32 %v61_v7, 7 }
  0x27   :  { %v45_v5 = vmax.f32 %v43_v3, %v44_v4 }
  0x28   :  { %v63_v13 = vsub.s32 0, %v62_v12  ;;  %v67_v15 = vsub.s32 1, %v62_v12 }
  0x29   :  { %46 = vmax.xlane.f32.xlu0 %v45_v5 }
  0x2a   :  { %v64_v16 = vrot.slane %v54_v14, %v63_v13  ;;  %v68_v18 = vrot.slane %v54_v14, %v67_v15  ;;  %v80_v20 = vrot.slane %v56_v17, %v63_v13  ;;  %v84_v21 = vrot.slane %v56_v17, %v67_v15 }
  0xb6   :  { %v47_v6 = vpop.xlane.xlu0 %46 }
  0xb7   :  { %v48_v8 = vsub.f32 %v43_v3, %v47_v6  ;;  %v49_v9 = vsub.f32 %v44_v4, %v47_v6 }
  0xb9   :  { %v50_v10 = vmul.f32 1.442695, %v48_v8  ;;  %v52_v11 = vmul.f32 1.442695, %v49_v9 }
  0xbb   :  { %107 = vpow2.f32 %v50_v10 }
  0xbc   :  { %109 = vpow2.f32 %v52_v11 }
  0xc5   :  { %v108_v19 = vpop.eup %107 }
  0xc6   :  { %v110_v22 = vpop.eup %109  ;;  %v71_v23 = vmul.f32 %v108_v19, %v64_v16  ;;  %v87_v27 = vmul.f32 %v108_v19, %v80_v20 }
  0xc7   :  { %v57_v24 = vadd.f32 %v110_v22, %v108_v19  ;;  %v72_v25 = vmul.f32 %v110_v22, %v68_v18  ;;  %v88_v28 = vmul.f32 %v110_v22, %v84_v21 }
  0xc9   :  { %58 = vadd.xlane.f32.xlu0 %v57_v24  ;;  %v73_v26 = vadd.f32 %v72_v25, %v71_v23  ;;  %v89_v29 = vadd.f32 %v88_v28, %v87_v27 }
  0xcb   :  { %74 = vadd.xlane.f32.xlu1 %v73_v26 }
  0xcf   :  { %90 = vadd.xlane.f32.xlu1 %v89_v29 }
 0x156   :  { %v59_v30 = vpop.xlane.xlu0 %58 }
 0x157   :  { %111 = vrcp.f32 %v59_v30 }
 0x158   :  { %v75_v31 = vpop.xlane.xlu1 %74 }
 0x15c   :  { %v91_v33 = vpop.xlane.xlu1 %90 }
 0x161   :  { %v112_v32 = vpop.eup %111 }
 0x162   :  { %v93_v34 = vmul.f32 %v112_v32, %v75_v31  ;;  %v94_v35 = vmul.f32 %v112_v32, %v91_v33 }
 0x164   :  { %v96_v36 = vsel %vm95_vm0, %v93_v34, %v94_v35 }
 0x165   :  { %98 = vst.msk [vmem:[%s216_s3] sm:$0xff] %vm97_vm1, %v96_v36 }
 0x166   :  { %103 = vsyncpa [#allocation4], 1 }
 0x167   :  { %104 = vsyncpa [#allocation6], 1 }

</bundles_post_ra>
